<compile_context>
chip_gen: v7x
topology: tpu7x:2x2x1
jax: 0.10.0
libtpu: 0.0.40
codegen_flags: <defaults>
</compile_context>

<pallas_src>
import jax
import jax.numpy as jnp
from jax.experimental import pallas as pl
from jax.experimental.pallas import tpu as pltpu


def _round_up(v, m):
    return ((v + m - 1) // m) * m


def _pick_chunk(tb, preferred):
    """Largest chunk in {preferred,512,256,128} that divides tb, else tb."""
    for c in (preferred, 512, 256, 128):
        if c <= tb and tb % c == 0:
            return c
    return tb


def _make_kernel(chunk, n_chunks, d_in, h_dim, d_out):
    """Build the fused SimpleNet kernel for one (d_in, tb) batch tile."""

    def kernel(x_ref, w1_ref, b1_ref, w2_ref, b2_ref, o_ref):
        # x_ref:  (d_in, tb)   batch on the lane axis
        # w1_ref: (H, d_in)    linear1 weight (PyTorch layout), VMEM-resident
        # b1_ref: (H, 1)
        # w2_ref: (H, d_out)   linear2 weight, transposed
        # b2_ref: (d_out, 1)
        # o_ref:  (d_out, tb)  lane-dense output tile

        # Hoist loop-invariant lane broadcasts once per grid step.  (JAX does
        # not CSE broadcast_in_dim; re-broadcasting per chunk would roughly
        # double the per-chunk VALU/XLU work.)
        w1_b = [jnp.broadcast_to(w1_ref[:, k:k + 1], (h_dim, chunk))
                for k in range(d_in)]
        b1_b = jnp.broadcast_to(b1_ref[...], (h_dim, chunk))
        w2_b = [jnp.broadcast_to(w2_ref[:, d:d + 1], (h_dim, chunk))
                for d in range(d_out)]
        b2_b = jnp.broadcast_to(b2_ref[...], (d_out, chunk))

        # Trace-time-unrolled loop over lane chunks.  Static slices only, so
        # lowering never needs dynamic lane-dim offsets.  Layer 1 + ReLU +
        # layer 2 + sigmoid are fused per chunk: the (H, chunk) hidden
        # activation (~16 vregs at chunk=512) never hits VMEM at (H, TB) size.
        for c in range(n_chunks):
            sl = slice(c * chunk, (c + 1) * chunk)

            # ----- linear1 + ReLU (VPU broadcast-FMAs; MXU skipped: K=d_in) --
            acc = b1_b
            for k in range(d_in):
                acc = acc + w1_b[k] * x_ref[k:k + 1, sl]   # (1,C) sublane-bcast
            h = jnp.maximum(acc, 0.0)

            # Dropout(p=0.3): identity in eval mode.
            # TODO(synk): training-mode dropout mask not implemented.

            # ----- linear2 + Sigmoid (mul + sublane reduce; MXU skipped: N=1) -
            rows = [jnp.sum(w2_b[d] * h, axis=0, keepdims=True)   # (1, C)
                    for d in range(d_out)]
            y = rows[0] if d_out == 1 else jnp.concatenate(rows, axis=0)
            o_ref[:, sl] = jax.nn.sigmoid(y + b2_b)

    return kernel


def simplenet_forward_feature_major(x_t, w1, b1, w2, b2, *,
                                    block_b=32768, chunk=512):
    """SimpleNet forward (eval mode); feature-major input.

    x_t: (input_dim, B)  -- feature-major (avoids a wrapper transpose pass)
    w1:  (hidden, input_dim)   PyTorch nn.Linear layout
    b1:  (hidden,)
    w2:  (output_dim, hidden)
    b2:  (output_dim,)
    returns (output_dim, B) float32
    """
    x_t = jnp.asarray(x_t, jnp.float32)
    w1 = jnp.asarray(w1, jnp.float32)
    b1 = jnp.asarray(b1, jnp.float32)
    w2 = jnp.asarray(w2, jnp.float32)
    b2 = jnp.asarray(b2, jnp.float32)

    d_in, B = x_t.shape
    H = w1.shape[0]
    d_out = w2.shape[0]
    assert w1.shape == (H, d_in) and b1.shape == (H,)
    assert w2.shape == (d_out, H) and b2.shape == (d_out,)
    assert block_b % 128 == 0, "block_b must be a multiple of 128 lanes"

    b1_col = b1.reshape(H, 1)
    w2_t = w2.T                                  # (H, d_out) -- tiny
    b2_col = b2.reshape(d_out, 1)

    # Batch tile: large enough to amortize per-grid-step overhead, a multiple
    # of 128 lanes (or the full batch), and capped at ceil(B/2) so there are
    # always >= 2 blocks for v7x's two TensorCores when B allows.
    if B <= 256:
        tb = B                                   # single full-dim block
    else:
        tb = min(block_b, _round_up(pl.cdiv(B, 2), 128))
    n_blocks = pl.cdiv(B, tb)                    # ragged last block: clamped DMA
    ck = _pick_chunk(tb, chunk)
    n_chunks = tb // ck

    kernel = _make_kernel(ck, n_chunks, d_in, H, d_out)

    out_t = pl.pallas_call(
        kernel,
        out_shape=jax.ShapeDtypeStruct((d_out, B), jnp.float32),
        grid=(n_blocks,),
        in_specs=[
            pl.BlockSpec((d_in, tb), lambda i: (0, i)),   # x: streamed per tile
            pl.BlockSpec((H, d_in), lambda i: (0, 0)),    # w1: VMEM-resident
            pl.BlockSpec((H, 1), lambda i: (0, 0)),       # b1
            pl.BlockSpec((H, d_out), lambda i: (0, 0)),   # w2^T
            pl.BlockSpec((d_out, 1), lambda i: (0, 0)),   # b2
        ],
        out_specs=pl.BlockSpec((d_out, tb), lambda i: (0, i)),
        compiler_params=pltpu.CompilerParams(
            dimension_semantics=("parallel",),            # megacore-shard batch
            vmem_limit_bytes=32 * 1024 * 1024,            # ~1 MiB actually used
        ),
    )(x_t, w1, b1_col, w2_t, b2_col)
    return out_t


def simplenet_forward(x, w1, b1, w2, b2, *, block_b=32768, chunk=512):
    """PyTorch-layout convenience wrapper: x (B, input_dim) -> (B, output_dim).

    Costs one extra HBM transpose pass each way; prefer
    simplenet_forward_feature_major for a feature-major pipeline.
    """
    x_t = jnp.asarray(x, jnp.float32).T
    out_t = simplenet_forward_feature_major(
        x_t, w1, b1, w2, b2, block_b=block_b, chunk=chunk)
    return out_t.T


def _reference_forward(x, w1, b1, w2, b2):
    h = jnp.maximum(x @ w1.T + b1, 0.0)
    return jax.nn.sigmoid(h @ w2.T + b2)


if __name__ == "__main__":
    # Moon-data style shapes: 2 input features, hidden 32, single sigmoid output.
    input_dim, hidden_dim, output_dim = 2, 32, 1

    key = jax.random.PRNGKey(0)
    kx, k1, k2, k3, k4 = jax.random.split(key, 5)

    # PyTorch-style uniform init bounds.
    bound1 = 1.0 / jnp.sqrt(input_dim)
    w1 = jax.random.uniform(k1, (hidden_dim, input_dim), jnp.float32, -bound1, bound1)
    b1 = jax.random.uniform(k2, (hidden_dim,), jnp.float32, -bound1, bound1)
    bound2 = 1.0 / jnp.sqrt(hidden_dim)
    w2 = jax.random.uniform(k3, (output_dim, hidden_dim), jnp.float32, -bound2, bound2)
    b2 = jax.random.uniform(k4, (output_dim,), jnp.float32, -bound2, bound2)

    # Case 1: tiny batch -> single block, single chunk.
    x1 = jax.random.normal(kx, (8, input_dim), dtype=jnp.float32)
    o1 = jax.block_until_ready(simplenet_forward(x1, w1, b1, w2, b2))
    r1 = _reference_forward(x1, w1, b1, w2, b2)
    assert o1.shape == (8, output_dim), o1.shape
    assert jnp.allclose(o1, r1, atol=1e-5, rtol=1e-5)

    # Case 2: ragged multi-block path (two 256-lane blocks, masked tail).
    x2 = jax.random.normal(kx, (300, input_dim), dtype=jnp.float32)
    o2 = jax.block_until_ready(simplenet_forward(x2, w1, b1, w2, b2))
    r2 = _reference_forward(x2, w1, b1, w2, b2)
    assert o2.shape == (300, output_dim), o2.shape
    assert jnp.allclose(o2, r2, atol=1e-5, rtol=1e-5)

    # Case 3: multi-block + multi-chunk fused inner loop (forced small tiles).
    x3 = jax.random.normal(kx, (1024, input_dim), dtype=jnp.float32)
    o3 = jax.block_until_ready(
        simplenet_forward(x3, w1, b1, w2, b2, block_b=512, chunk=128))
    r3 = _reference_forward(x3, w1, b1, w2, b2)
    assert o3.shape == (1024, output_dim), o3.shape
    assert jnp.allclose(o3, r3, atol=1e-5, rtol=1e-5)

    print("KERNEL_OK")
</pallas_src>

<mosaic_0001>
module attributes {stable_mosaic.version = 11 : i64} {
  func.func @kernel(%arg0: i32, %arg1: memref<2x8xf32, #tpu.memory_space<vmem>>, %arg2: memref<32x2xf32, #tpu.memory_space<vmem>>, %arg3: memref<32x1xf32, #tpu.memory_space<vmem>>, %arg4: memref<32x1xf32, #tpu.memory_space<vmem>>, %arg5: memref<1x1xf32, #tpu.memory_space<vmem>>, %arg6: memref<1x8xf32, #tpu.memory_space<vmem>>) attributes {dimension_semantics = [#tpu.dimension_semantics<parallel>], iteration_bounds = array<i64: 1>, scalar_prefetch = 0 : i64, scratch_operands = 0 : i64, tpu.core_type = #tpu.core_type<tc>, window_params = [{transform_indices = @transform_0, window_bounds = array<i64: 2, 8>}, {pipeline_mode = #tpu.pipeline_mode<synchronous>, transform_indices = @transform_1, window_bounds = array<i64: 32, 2>}, {pipeline_mode = #tpu.pipeline_mode<synchronous>, transform_indices = @transform_2, window_bounds = array<i64: 32, 1>}, {pipeline_mode = #tpu.pipeline_mode<synchronous>, transform_indices = @transform_3, window_bounds = array<i64: 32, 1>}, {pipeline_mode = #tpu.pipeline_mode<synchronous>, transform_indices = @transform_4, window_bounds = array<i64: 1, 1>}, {transform_indices = @transform_5, window_bounds = array<i64: 1, 8>}]} {
    %c0 = arith.constant 0 : index
    %c0_0 = arith.constant 0 : index
    %0 = vector.load %arg2[%c0, %c0_0] : memref<32x2xf32, #tpu.memory_space<vmem>>, vector<32x1xf32>
    %1 = vector.shape_cast %0 : vector<32x1xf32> to vector<32x1xf32>
    %2 = vector.broadcast %1 : vector<32x1xf32> to vector<32x8xf32>
    %c0_1 = arith.constant 0 : index
    %c1 = arith.constant 1 : index
    %3 = vector.load %arg2[%c0_1, %c1] : memref<32x2xf32, #tpu.memory_space<vmem>>, vector<32x1xf32>
    %4 = vector.shape_cast %3 : vector<32x1xf32> to vector<32x1xf32>
    %5 = vector.broadcast %4 : vector<32x1xf32> to vector<32x8xf32>
    %c0_2 = arith.constant 0 : index
    %c0_3 = arith.constant 0 : index
    %6 = vector.load %arg3[%c0_2, %c0_3] : memref<32x1xf32, #tpu.memory_space<vmem>>, vector<32x1xf32>
    %7 = vector.shape_cast %6 : vector<32x1xf32> to vector<32x1xf32>
    %8 = vector.broadcast %7 : vector<32x1xf32> to vector<32x8xf32>
    %c0_4 = arith.constant 0 : index
    %c0_5 = arith.constant 0 : index
    %9 = vector.load %arg4[%c0_4, %c0_5] : memref<32x1xf32, #tpu.memory_space<vmem>>, vector<32x1xf32>
    %10 = vector.shape_cast %9 : vector<32x1xf32> to vector<32x1xf32>
    %11 = vector.broadcast %10 : vector<32x1xf32> to vector<32x8xf32>
    %c0_6 = arith.constant 0 : index
    %c0_7 = arith.constant 0 : index
    %12 = vector.load %arg5[%c0_6, %c0_7] : memref<1x1xf32, #tpu.memory_space<vmem>>, vector<1x1xf32>
    %13 = vector.shape_cast %12 : vector<1x1xf32> to vector<1x1xf32>
    %14 = vector.broadcast %13 : vector<1x1xf32> to vector<1x8xf32>
    %c0_8 = arith.constant 0 : index
    %c0_9 = arith.constant 0 : index
    %15 = vector.load %arg1[%c0_8, %c0_9] : memref<2x8xf32, #tpu.memory_space<vmem>>, vector<1x8xf32>
    %16 = vector.broadcast %15 : vector<1x8xf32> to vector<32x8xf32>
    %17 = arith.mulf %2, %16 : vector<32x8xf32>
    %18 = arith.addf %8, %17 : vector<32x8xf32>
    %c1_10 = arith.constant 1 : index
    %c0_11 = arith.constant 0 : index
    %19 = vector.load %arg1[%c1_10, %c0_11] : memref<2x8xf32, #tpu.memory_space<vmem>>, vector<1x8xf32>
    %20 = vector.broadcast %19 : vector<1x8xf32> to vector<32x8xf32>
    %21 = arith.mulf %5, %20 : vector<32x8xf32>
    %22 = arith.addf %18, %21 : vector<32x8xf32>
    %cst = arith.constant 0.000000e+00 : f32
    %23 = vector.broadcast %cst : f32 to vector<32x8xf32>
    %24 = arith.maximumf %22, %23 : vector<32x8xf32>
    %25 = arith.mulf %11, %24 : vector<32x8xf32>
    %cst_12 = arith.constant dense<0.000000e+00> : vector<8xf32>
    %26 = vector.multi_reduction <add>, %25, %cst_12 [0] : vector<32x8xf32> to vector<8xf32>
    %27 = vector.shape_cast %26 : vector<8xf32> to vector<1x8xf32>
    %28 = arith.addf %27, %14 : vector<1x8xf32>
    %29 = arith.negf %28 : vector<1x8xf32>
    %30 = math.exp %29 : vector<1x8xf32>
    %cst_13 = arith.constant 1.000000e+00 : f32
    %31 = vector.broadcast %cst_13 : f32 to vector<1x8xf32>
    %32 = arith.addf %31, %30 : vector<1x8xf32>
    %33 = arith.divf %31, %32 : vector<1x8xf32>
    %c0_14 = arith.constant 0 : index
    %c0_15 = arith.constant 0 : index
    %34 = vector.load %arg6[%c0_14, %c0_15] : memref<1x8xf32, #tpu.memory_space<vmem>>, vector<1x8xf32>
    tpu.vector_store %arg6[%c0_14, %c0_15], %33 {strides = array<i32>} : memref<1x8xf32, #tpu.memory_space<vmem>>, vector<1x8xf32>,
    return
  }
  func.func @transform_0(%arg0: i32) -> (i32, i32) {
    %c0_i32 = arith.constant 0 : i32
    %c0_i32_0 = arith.constant 0 : i32
    return %c0_i32, %arg0 : i32, i32
  }
  func.func @transform_1(%arg0: i32) -> (i32, i32) {
    %c0_i32 = arith.constant 0 : i32
    %c0_i32_0 = arith.constant 0 : i32
    %c0_i32_1 = arith.constant 0 : i32
    return %c0_i32, %c0_i32_0 : i32, i32
  }
  func.func @transform_2(%arg0: i32) -> (i32, i32) {
    %c0_i32 = arith.constant 0 : i32
    %c0_i32_0 = arith.constant 0 : i32
    %c0_i32_1 = arith.constant 0 : i32
    return %c0_i32, %c0_i32_0 : i32, i32
  }
  func.func @transform_3(%arg0: i32) -> (i32, i32) {
    %c0_i32 = arith.constant 0 : i32
    %c0_i32_0 = arith.constant 0 : i32
    %c0_i32_1 = arith.constant 0 : i32
    return %c0_i32, %c0_i32_0 : i32, i32
  }
  func.func @transform_4(%arg0: i32) -> (i32, i32) {
    %c0_i32 = arith.constant 0 : i32
    %c0_i32_0 = arith.constant 0 : i32
    %c0_i32_1 = arith.constant 0 : i32
    return %c0_i32, %c0_i32_0 : i32, i32
  }
  func.func @transform_5(%arg0: i32) -> (i32, i32) {
    %c0_i32 = arith.constant 0 : i32
    %c0_i32_0 = arith.constant 0 : i32
    return %c0_i32, %arg0 : i32, i32
  }
}

</mosaic_0001>

<bundles_post_ra>
// kernel: tpu_custom_call.1
= control target key start
LH: loop header
LB: loop body
LE: loop exit
PB: predicated region body
PF: predicated region fallthrough
CT: control target
= control target key end

     0   :  { %s323_s0 = inlined_call_operand.vmem [shape: f32[2,8], index: 0, kind: input, shape index: {}]   ;;  %s324_s1 = inlined_call_operand.vmem [shape: f32[32,2], index: 1, kind: input, shape index: {}]   ;;  %s325_s2 = inlined_call_operand.vmem [shape: f32[32,1], index: 2, kind: input, shape index: {}]   ;;  %s326_s3 = inlined_call_operand.vmem [shape: f32[32,1], index: 3, kind: input, shape index: {}]   ;;  %s327_s4 = inlined_call_operand.<no memory space> [shape: f32[1,1], index: 4, kind: input, shape index: {}]   ;;  %s328_s5 = inlined_call_operand.hbm [shape: f32[1,8], index: 5, kind: output, shape index: {}]  }
   0x1   :  { %v10_v0 = vstv %s327_s4 }
   0x2   :  { %11 = vst [vmem:[#allocation2] sm:$0x1] %v10_v0 }
   0x3   :  { %v25_v1 = vld [vmem:[%s324_s1 + $0x10] sm:$0xff]  ;;  %v24_v2 = vld [vmem:[%s324_s1 + $0x8] sm:$0xff]  ;;  %v233_v3 = vmov 1   ;;  %v234_v4 = vmov 0   ;;  %v26_v5 = vld [vmem:[%s324_s1 + $0x18] sm:$0xff] }
   0x4   :  { %200 = vset.pattern.permute.xlu0 %v233_v3  ;;  %198 = vset.pattern.permute.xlu1 %v234_v4  ;;  %v23_v6 = vld [vmem:[%s324_s1] sm:$0xff] }
   0x5   :  { %39 = vperm.xlu1 %198, %v25_v1   ;;  %52 = vperm.xlu0 %200, %v24_v2  }
   0x6   :  { %12 = vsyncpa [#allocation4], 0  ;;  %v63_v7 = vld [vmem:[%s325_s2] sm:$0xff]  ;;  %v64_v8 = vld [vmem:[%s325_s2 + $0x8] sm:$0xff]  ;;  %vm155_vm0 = vcmask 64512   ;;  %v117_v0 = vlaneseq  ;;  %vm176_vm1 = vcmask 57344  }
   0x7   :  { %v88_v9 = vld [vmem:[%s326_s3 + $0x8] sm:$0xff]  ;;  %v65_v10 = vld [vmem:[%s325_s2 + $0x10] sm:$0xff]  ;;  %v66_v12 = vld [vmem:[%s325_s2 + $0x18] sm:$0xff] }
   0x8   :  { %v87_v13 = vld [vmem:[%s326_s3] sm:$0xff]  ;;  %v89_v14 = vld [vmem:[%s326_s3 + $0x10] sm:$0xff]  ;;  %v90_v15 = vld [vmem:[%s326_s3 + $0x18] sm:$0xff] }
   0x9   :  { %199 = vset.pattern.permute.xlu1 %v233_v3  ;;  %60 = vperm.xlu0 %200, %v26_v5   ;;  %v111_v11 = vld [vmem:[#allocation2] sm:$0x1]  ;;  %v193_v28 = vld [vmem:[%s323_s0 + $0x1] ss:$0 sm:$0xff] }
   0xa   :  { %48 = vperm.xlu1 %199, %v23_v6   ;;  %v192_v24 = vld [vmem:[%s323_s0] ss:$0 sm:$0xff]  ;;  %s235_s0 = smov [#allocation3]  }
   0xb   :  { %s184_s3 = sshll.u32 %s235_s0, 4  ;;  %s185_s3 = int_to_ptr.vmem [resolvable:$true] %s184_s3 }
   0xc   :  { %s209_s20 = scalar_lea.vmem %s185_s3, 16  ;;  %s213_s21 = scalar_lea.vmem %s185_s3, 32 }
   0xd   :  { %204 = vset.pattern.permute.xlu0 %v234_v4  ;;  %p210_p0 = scmp.ne.s32.totalorder %s185_s3, %s209_s20  ;;  %p214_p1 = scmp.lt.s32.totalorder %s185_s3, %s185_s3 }
   0xe   :  { %29 = vperm.xlu0 %204, %v23_v6   ;;  %201 = vset.pattern.permute.xlu1 %v234_v4  ;;  %p215_p2 = scmp.lt.s32.totalorder %s213_s21, %s209_s20 }
   0xf   :  { %69 = vperm.xlu1 %201, %v63_v7  }
  0x10   :  { %p216_p3 = por %p215_p2, %p214_p1 }
  0x12   :  { %34 = vperm.xlu0 %204, %v24_v2   ;;  %p217_p4 = pnand %p216_p3, %p210_p0 }
  0x13   :  { %74 = vperm.xlu1 %201, %v64_v8  }
  0x16   :  { %44 = vperm.xlu0 %204, %v26_v5  }
  0x17   :  { %202 = vset.pattern.permute.xlu1 %v233_v3  ;;  %v118_v3 = vshrl.u32 %v117_v0, 7 }
  0x18   :  { %56 = vperm.xlu1 %202, %v25_v1  }
  0x19   :  { %v119_v6 = vsub.s32 0, %v118_v3 }
  0x1a   :  { %98 = vperm.xlu0 %204, %v88_v9  }
  0x1c   :  { %203 = vset.pattern.permute.xlu1 %v234_v4 }
  0x1d   :  { %79 = vperm.xlu1 %203, %v65_v10  }
  0x1e   :  { %114 = vperm.xlu0 %204, %v111_v11  }
  0x21   :  { %84 = vperm.xlu1 %203, %v66_v12  }
  0x25   :  { %93 = vperm.xlu1 %203, %v87_v13  }
  0x29   :  { %103 = vperm.xlu1 %203, %v89_v14  }
  0x2d   :  { %108 = vperm.xlu1 %203, %v90_v15  }
  0x84   :  { %v40_v16 = vpop.permute.xlu1 %39  ;;  %v53_v17 = vpop.permute.xlu0 %52 }
  0x85   :  { %v140_v29 = vmul.f32 %v193_v28, %v53_v17  ;;  %v128_v33 = vmul.f32 %v192_v24, %v40_v16 }
  0x88   :  { %v61_v18 = vpop.permute.xlu0 %60 }
  0x89   :  { %v49_v19 = vpop.permute.xlu1 %48  ;;  %v142_v48 = vmul.f32 %v193_v28, %v61_v18 }
  0x8a   :  { %v139_v34 = vmul.f32 %v193_v28, %v49_v19 }
  0x8d   :  { %v30_v20 = vpop.permute.xlu0 %29 }
  0x8e   :  { %v70_v21 = vpop.permute.xlu1 %69  ;;  %v126_v25 = vmul.f32 %v192_v24, %v30_v20 }
  0x90   :  { %v130_v30 = vadd.f32 %v126_v25, %v70_v21 }
  0x91   :  { %v35_v23 = vpop.permute.xlu0 %34 }
  0x92   :  { %v75_v22 = vpop.permute.xlu1 %74  ;;  %v127_v26 = vmul.f32 %v192_v24, %v35_v23  ;;  %v143_v36 = vadd.f32 %v139_v34, %v130_v30 }
  0x94   :  { %v131_v31 = vadd.f32 %v127_v26, %v75_v22  ;;  %v147_v45 = vmax.f32 %v143_v36, 0.0 }
  0x95   :  { %v45_v35 = vpop.permute.xlu0 %44 }
  0x96   :  { %v144_v37 = vadd.f32 %v140_v29, %v131_v31  ;;  %v129_v40 = vmul.f32 %v192_v24, %v45_v35 }
  0x97   :  { %v57_v27 = vpop.permute.xlu1 %56 }
  0x98   :  { %v141_v41 = vmul.f32 %v193_v28, %v57_v27  ;;  %v148_v42 = vmax.f32 %v144_v37, 0.0 }
  0x99   :  { %v99_v46 = vpop.permute.xlu0 %98 }
  0x9a   :  { %v152_v50 = vmul.f32 %v148_v42, %v99_v46 }
  0x9c   :  { %v80_v32 = vpop.permute.xlu1 %79  ;;  %v157_v56 = vsel %vm155_vm0, %v152_v50, 0.0 }
  0x9d   :  { %v132_v38 = vadd.f32 %v128_v33, %v80_v32  ;;  %v115_v8 = vpop.permute.xlu0 %114 }
  0x9e   :  { %v120_v10 = vrot.slane %v115_v8, %v119_v6 }
  0x9f   :  { %v145_v43 = vadd.f32 %v141_v41, %v132_v38 }
  0xa0   :  { %v85_v39 = vpop.permute.xlu1 %84 }
  0xa1   :  { %v133_v44 = vadd.f32 %v129_v40, %v85_v39  ;;  %v149_v52 = vmax.f32 %v145_v43, 0.0 }
  0xa3   :  { %v146_v51 = vadd.f32 %v142_v48, %v133_v44 }
  0xa4   :  { %v94_v47 = vpop.permute.xlu1 %93 }
  0xa5   :  { %v151_v49 = vmul.f32 %v147_v45, %v94_v47  ;;  %v150_v58 = vmax.f32 %v146_v51, 0.0 }
  0xa7   :  { %v156_v54 = vsel %vm155_vm0, %v151_v49, 0.0 }
  0xa8   :  { %v104_v53 = vpop.permute.xlu1 %103  ;;  %v158_v59 = vadd.f32 %v157_v56, %v156_v54 }
  0xa9   :  { %v153_v55 = vmul.f32 %v149_v52, %v104_v53 }
  0xab   :  { %v159_v57 = vsel %vm155_vm0, %v153_v55, 0.0 }
  0xac   :  { %v109_v60 = vpop.permute.xlu1 %108  ;;  %v160_v62 = vadd.f32 %v159_v57, %v158_v59 }
  0xad   :  { %v154_v61 = vmul.f32 %v150_v58, %v109_v60 }
  0xaf   :  { %v161_v63 = vsel %vm155_vm0, %v154_v61, 0.0 }
  0xb0   :  { %v162_v1 = vadd.f32 %v161_v63, %v160_v62 }
  0xb2   :  { %v163_v2 = vrot.slane %v162_v1, 4 }
  0xb4   :  { %v164_v4 = vadd.f32 %v163_v2, %v162_v1 }
  0xb6   :  { %v165_v5 = vrot.slane %v164_v4, 2 }
  0xb8   :  { %v166_v7 = vadd.f32 %v165_v5, %v164_v4 }
  0xba   :  { %v167_v9 = vrot.slane %v166_v7, 1 }
  0xbc   :  { %v168_v11 = vadd.f32 %v167_v9, %v166_v7 }
  0xbe   :  { %v169_v12 = vadd.f32 %v168_v11, %v120_v10 }
  0xc0   :  { %v194_v13 = vmul.f32 -1.442695, %v169_v12 }
  0xc2   :  { %205 = vpow2.f32 %v194_v13 }
  0xcc   :  { %v206_v14 = vpop.eup %205 }
  0xcd   :  { %v173_v15 = vadd.f32 1.0, %v206_v14 }
  0xcf   :  { %207 = vrcp.f32 %v173_v15 }
  0xd9   :  { %v208_v16 = vpop.eup %207 }
  0xda   :  { %177 = vst.msk [vmem:[#allocation3] sm:$0x1] %vm176_vm1, %v208_v16 }
  0xdb   :  { %220 = shalt.err (!%p217_p4)
}
  0xdc   :  { %s221_s24 = scalar_lea.hbm %s328_s5, 16 }
  0xdd   :  { %p222_p5 = scmp.ne.s32.totalorder %s328_s5, %s221_s24  ;;  %p225_p6 = scmp.lt.u32.totalorder %s221_s24, %s328_s5 }
  0xdf   :  { %p227_p7 = pnand %p225_p6, %p222_p5 }
  0xe1   :  { %230 = shalt.err (!%p227_p7)
}
  0xe2   :  { %187 = dma.vmem_to_hbm [thread:$0]  %s185_s3, 16, %s328_s5, [#allocation4]  }
  0xe3   :  { %231 = dma.done.wait [#allocation4], 16  }
  0xe4   :  { %232 = vsyncadd [#allocation4], 4294967280 }
  0xe5   :  { %191 = vsyncpa [#allocation4], 1 }

</bundles_post_ra>
